<compile_context>
chip_gen: v7x
topology: tpu7x:2x2x1
jax: 0.10.0
libtpu: 0.0.40
codegen_flags: <defaults>
</compile_context>

<pallas_src>
import jax
import jax.numpy as jnp
from jax.experimental import pallas as pl
from jax.experimental.pallas import tpu as pltpu

KERNEL_SIZES = (4, 4, 3, 3, 2, 2)   # cnn1..cnn6 heights (width is always E=100)
E = 100                             # embedding width (torch: nn.Embedding(44988, 100))
E_PAD = 128                         # lane-padded embedding width
C = 128                             # lane-padded "column" dim (conv taps / feats / logits)
KMAX = max(KERNEL_SIZES)            # 4


def _round_up(x, m):
    return ((x + m - 1) // m) * m


def _vmem_limit_bytes():
    """Generation-aware scoped-VMEM limit (v5e/v6e: ~96 MiB, v7x: ~48 MiB)."""
    try:
        cap = int(pltpu.get_tpu_info().vmem_capacity_bytes)
    except Exception:
        cap = 64 * 1024 * 1024
    return int(min(3 * cap // 4, 100 * 1024 * 1024))


def _pick_tiling(B, L, b_tile=None, act_budget_bytes=24 * 1024 * 1024):
    """Balanced batch tiles: bt multiple of 8, padding <= one tile, >=2 steps
    when B allows (keeps both v7x TensorCores busy under 'parallel')."""
    if b_tile is None:
        # per-row VMEM: bf16 emb (double-buffered) + ~3 live f32 (L,128) slabs.
        per_row = L * E_PAD * (2 * 2 + 3 * 4) + 1024
        b_tile = max(8, min(1024, act_budget_bytes // per_row))
    b_tile = max(8, (b_tile // 8) * 8)
    n_steps = max(1, -(-B // b_tile))
    if n_steps == 1 and B >= 16:
        n_steps = 2                       # give the second v7x TC some work
    bt = _round_up(-(-B // n_steps), 8)
    return bt, n_steps, bt * n_steps


def cnn_classify_kernel(emb_ref, wstack_ref, bmask_ref, wlin_ref, blin_ref, out_ref):
    """6 convs (one MXU matmul) + roll-based tap combine + ReLU + masked
    max-pool + linear + softmax.

    emb_ref   : (Bt, L, 128) bf16  zero-padded embeddings (batch tile)
    wstack_ref: (128, 128)   bf16  stacked conv taps, col = 8*dh + i
    bmask_ref : (L, 128)     f32   conv bias at valid positions, else -1e30
    wlin_ref  : (128, 128)   bf16  Linear weight (transposed, zero padded)
    blin_ref  : (1, 128)     f32   Linear bias (padded lanes = -1e30)
    out_ref   : (Bt, 128)    f32   softmax probs (lanes >= out_dim are 0)
    """
    bt, L, ep = emb_ref.shape
    c = wstack_ref.shape[1]
    n_rows = bt * L

    # (1) All six convolutions as a single MXU matmul over the padded width.
    proj = jnp.dot(emb_ref[...].reshape(n_rows, ep), wstack_ref[...],
                   preferred_element_type=jnp.float32)           # (Bt*L, 128) f32

    # (2) Combine the k taps with circular rolls (XLU slot, no copies):
    #     row r reads row r+dh (sublane roll), lane 8*dh+i maps back to lane i
    #     (lane roll). Wrapped / cross-batch rows land only at positions
    #     p > L - k_i, which the bias/validity mask zeroes below.
    total = proj                                                 # dh = 0 term
    for dh in range(1, KMAX):
        sh = pltpu.roll(proj, shift=n_rows - dh, axis=0)         # rows <- rows + dh
        sh = pltpu.roll(sh, shift=c - 8 * dh, axis=1)            # lane 8*dh+i -> lane i
        total = total + sh

    # (3) bias + position-validity (folded into bmask) + ReLU + max-pool.
    act = jnp.maximum(total.reshape(bt, L, c) + bmask_ref[...].reshape(1, L, c), 0.0)
    feat = jnp.max(act, axis=1)                                  # (Bt, 128); lanes>=6 -> 0

    # (4) Linear (bf16 MXU, f32 acc) + softmax; padded logit lanes get -1e30.
    logits = jnp.dot(feat.astype(jnp.bfloat16), wlin_ref[...],
                     preferred_element_type=jnp.float32) + blin_ref[...]
    m = jnp.max(logits, axis=1, keepdims=True)
    e = jnp.exp(logits - m)
    s = jnp.sum(e, axis=1, keepdims=True)
    out_ref[...] = e * pl.reciprocal(s, approx=True)             # EUP slot


def pack_params(emb_table, conv_ws, bconv, wlin, blin):
    """One-time parameter packing (incl. the big embedding-table pad + bf16 cast)."""
    out_dim = wlin.shape[0]
    emb_pad = jnp.pad(emb_table.astype(jnp.bfloat16), ((0, 0), (0, E_PAD - E)))
    wstack = jnp.zeros((E_PAD, C), jnp.float32)
    for i, (w, k) in enumerate(zip(conv_ws, KERNEL_SIZES)):
        for dh in range(k):
            wstack = wstack.at[:E, 8 * dh + i].set(w[dh, :].astype(jnp.float32))
    wstack = wstack.astype(jnp.bfloat16)
    wlin_pad = jnp.zeros((C, C), jnp.float32).at[:6, :out_dim].set(
        jnp.transpose(wlin).astype(jnp.float32)).astype(jnp.bfloat16)
    blin_pad = jnp.full((1, C), -1e30, jnp.float32).at[0, :out_dim].set(
        blin.astype(jnp.float32))
    return dict(emb=emb_pad, wstack=wstack, bconv=bconv.astype(jnp.float32),
                wlin=wlin_pad, blin=blin_pad, out_dim=out_dim)


def clasify_forward(token_input, params, *, b_tile=None):
    """Mirrors ClasifyModel.forward: only token_input[0] is used (shape (B, L))."""
    ids = token_input[0]                                         # (B, L) int32
    B, L = ids.shape
    out_dim = params["out_dim"]

    # L-dependent packing (tiny, trace-time): bias folded with validity mask.
    # bmask[p, i] = bconv[i] if p <= L - k_i else -1e30; lanes >= 6 are -1e30.
    # NOTE: if L < max kernel size, the invalid convs mask to feat=0 instead of
    # erroring like torch Conv2d would (degenerate-input divergence).
    kvec = jnp.asarray(KERNEL_SIZES, jnp.int32)
    pos = jnp.arange(L, dtype=jnp.int32)[:, None]                # (L, 1)
    valid6 = pos <= (L - kvec)[None, :]                          # (L, 6)
    bias6 = jnp.where(valid6, params["bconv"][None, :], -1e30)
    bmask = jnp.full((L, C), -1e30, jnp.float32).at[:, :6].set(bias6)

    # Single-pass bf16 gather from the pre-padded table (no pad/cast passes).
    # TODO(synk): fusing the gather in-kernel (PrefetchScalarGridSpec + per-row
    # DMA from pl.ANY) is possible but descriptor-overhead bound for small L.
    emb = params["emb"][ids]                                     # (B, L, 128) bf16

    bt, n_steps, B_pad = _pick_tiling(B, L, b_tile)
    if B_pad != B:
        emb = jnp.pad(emb, ((0, B_pad - B), (0, 0), (0, 0)))

    out_pad = pl.pallas_call(
        cnn_classify_kernel,
        out_shape=jax.ShapeDtypeStruct((B_pad, C), jnp.float32),
        grid=(n_steps,),
        in_specs=[
            pl.BlockSpec((bt, L, E_PAD), lambda b: (b, 0, 0)),   # embeddings (batch tiled)
            pl.BlockSpec((E_PAD, C), lambda b: (0, 0)),          # stacked conv taps (bf16)
            pl.BlockSpec((L, C), lambda b: (0, 0)),              # bias + validity mask
            pl.BlockSpec((C, C), lambda b: (0, 0)),              # linear weight (bf16, padded)
            pl.BlockSpec((1, C), lambda b: (0, 0)),              # linear bias (padded -1e30)
        ],
        out_specs=pl.BlockSpec((bt, C), lambda b: (b, 0)),
        compiler_params=pltpu.CompilerParams(
            dimension_semantics=("parallel",),
            vmem_limit_bytes=_vmem_limit_bytes()),
    )(emb, params["wstack"], bmask, params["wlin"], params["blin"])

    # TODO(synk): F.dropout(p=0.5) in the torch forward is stochastic (training
    # semantics); applied as identity (eval semantics) here.
    return out_pad[:B, :out_dim]


if __name__ == "__main__":
    # Small shapes consistent with the module: in_dim (seq) = 8, batch = 2,
    # out_dim = 4, embedding dim fixed at 100, vocab = 44988.
    B, L, OUT_DIM = 2, 8, 4
    VOCAB = 44988

    key = jax.random.PRNGKey(0)
    keys = jax.random.split(key, 12)

    emb_table = 0.02 * jax.random.normal(keys[0], (VOCAB, E), jnp.float32)
    conv_ws = []
    for i, k in enumerate(KERNEL_SIZES):
        scale = (1.0 / (k * E)) ** 0.5
        conv_ws.append(scale * jax.random.normal(keys[1 + i], (k, E), jnp.float32))
    bconv = 0.01 * jax.random.normal(keys[7], (6,), jnp.float32)
    wlin = (1.0 / 6.0) ** 0.5 * jax.random.normal(keys[8], (OUT_DIM, 6), jnp.float32)
    blin = 0.01 * jax.random.normal(keys[9], (OUT_DIM,), jnp.float32)

    # Input mirrors `input[0]` usage: shape (1, B, L) of token ids.
    token_input = jax.random.randint(keys[10], (1, B, L), 0, VOCAB, dtype=jnp.int32)

    params = pack_params(emb_table, conv_ws, bconv, wlin, blin)
    out = clasify_forward(token_input, params)
    out = jax.block_until_ready(out)

    # Pure-JAX f32 reference of the same forward pass.
    def ref_forward():
        emb = emb_table[token_input[0]]                          # (B, L, E)
        feats = []
        for w, b, k in zip(conv_ws, bconv, KERNEL_SIZES):
            lout = L - k + 1
            acc = sum(jnp.einsum('ble,e->bl', emb[:, dh:dh + lout, :], w[dh])
                      for dh in range(k)) + b
            feats.append(jnp.max(jnp.maximum(acc, 0.0), axis=1))
        feat = jnp.stack(feats, axis=1)                          # (B, 6)
        logits = feat @ wlin.T + blin
        return jax.nn.softmax(logits, axis=1)

    ref = jax.block_until_ready(ref_forward())

    assert out.shape == (B, OUT_DIM), out.shape
    assert bool(jnp.all(jnp.isfinite(out)))
    assert bool(jnp.allclose(jnp.sum(out, axis=1), 1.0, atol=3e-3))
    assert bool(jnp.allclose(out, ref, atol=3e-2, rtol=3e-2)), (out, ref)
    print("KERNEL_OK")
</pallas_src>

<mosaic_0001>
module attributes {stable_mosaic.version = 11 : i64} {
  func.func @cnn_classify_kernel(%arg0: i32, %arg1: memref<8x8x128xbf16, #tpu.memory_space<vmem>>, %arg2: memref<128x128xbf16, #tpu.memory_space<vmem>>, %arg3: memref<8x128xf32, #tpu.memory_space<vmem>>, %arg4: memref<128x128xbf16, #tpu.memory_space<vmem>>, %arg5: memref<1x128xf32, #tpu.memory_space<vmem>>, %arg6: memref<8x128xf32, #tpu.memory_space<vmem>>) attributes {dimension_semantics = [#tpu.dimension_semantics<parallel>], iteration_bounds = array<i64: 1>, scalar_prefetch = 0 : i64, scratch_operands = 0 : i64, tpu.core_type = #tpu.core_type<tc>, window_params = [{transform_indices = @transform_0, window_bounds = array<i64: 8, 8, 128>}, {pipeline_mode = #tpu.pipeline_mode<synchronous>, transform_indices = @transform_1, window_bounds = array<i64: 128, 128>}, {pipeline_mode = #tpu.pipeline_mode<synchronous>, transform_indices = @transform_2, window_bounds = array<i64: 8, 128>}, {pipeline_mode = #tpu.pipeline_mode<synchronous>, transform_indices = @transform_3, window_bounds = array<i64: 128, 128>}, {pipeline_mode = #tpu.pipeline_mode<synchronous>, transform_indices = @transform_4, window_bounds = array<i64: 1, 128>}, {transform_indices = @transform_5, window_bounds = array<i64: 8, 128>}]} {
    %c0 = arith.constant 0 : index
    %c0_0 = arith.constant 0 : index
    %c0_1 = arith.constant 0 : index
    %0 = vector.load %arg1[%c0, %c0_0, %c0_1] : memref<8x8x128xbf16, #tpu.memory_space<vmem>>, vector<8x8x128xbf16>
    %1 = vector.shape_cast %0 : vector<8x8x128xbf16> to vector<64x128xbf16>
    %c0_2 = arith.constant 0 : index
    %c0_3 = arith.constant 0 : index
    %2 = vector.load %arg2[%c0_2, %c0_3] : memref<128x128xbf16, #tpu.memory_space<vmem>>, vector<128x128xbf16>
    %cst = arith.constant dense<0.000000e+00> : vector<64x128xf32>
    %3 = tpu.matmul %1, %2, %cst {dimension_numbers = #tpu.dot_dimension_numbers<[1], [0], [0], [1], [0, 0, 1, 1], [], []>} : vector<64x128xbf16>, vector<128x128xbf16>, vector<64x128xf32> -> vector<64x128xf32>
    %c63_i32 = arith.constant 63 : i32
    %4 = tpu.dynamic_rotate %3 by %c63_i32 dim 0 : vector<64x128xf32>, i32 -> vector<64x128xf32>
    %c120_i32 = arith.constant 120 : i32
    %5 = tpu.dynamic_rotate %4 by %c120_i32 dim 1 : vector<64x128xf32>, i32 -> vector<64x128xf32>
    %6 = arith.addf %3, %5 : vector<64x128xf32>
    %c62_i32 = arith.constant 62 : i32
    %7 = tpu.dynamic_rotate %3 by %c62_i32 dim 0 : vector<64x128xf32>, i32 -> vector<64x128xf32>
    %c112_i32 = arith.constant 112 : i32
    %8 = tpu.dynamic_rotate %7 by %c112_i32 dim 1 : vector<64x128xf32>, i32 -> vector<64x128xf32>
    %9 = arith.addf %6, %8 : vector<64x128xf32>
    %c61_i32 = arith.constant 61 : i32
    %10 = tpu.dynamic_rotate %3 by %c61_i32 dim 0 : vector<64x128xf32>, i32 -> vector<64x128xf32>
    %c104_i32 = arith.constant 104 : i32
    %11 = tpu.dynamic_rotate %10 by %c104_i32 dim 1 : vector<64x128xf32>, i32 -> vector<64x128xf32>
    %12 = arith.addf %9, %11 : vector<64x128xf32>
    %13 = vector.shape_cast %12 : vector<64x128xf32> to vector<8x8x128xf32>
    %c0_4 = arith.constant 0 : index
    %c0_5 = arith.constant 0 : index
    %14 = vector.load %arg3[%c0_4, %c0_5] : memref<8x128xf32, #tpu.memory_space<vmem>>, vector<8x128xf32>
    %15 = vector.shape_cast %14 : vector<8x128xf32> to vector<1x8x128xf32>
    %16 = vector.broadcast %15 : vector<1x8x128xf32> to vector<8x8x128xf32>
    %17 = arith.addf %13, %16 : vector<8x8x128xf32>
    %cst_6 = arith.constant 0.000000e+00 : f32
    %18 = vector.broadcast %cst_6 : f32 to vector<8x8x128xf32>
    %19 = arith.maximumf %17, %18 : vector<8x8x128xf32>
    %cst_7 = arith.constant dense<0xFF800000> : vector<8x128xf32>
    %20 = vector.multi_reduction <maximumf>, %19, %cst_7 [1] : vector<8x8x128xf32> to vector<8x128xf32>
    %21 = arith.truncf %20 : vector<8x128xf32> to vector<8x128xbf16>
    %c0_8 = arith.constant 0 : index
    %c0_9 = arith.constant 0 : index
    %22 = vector.load %arg4[%c0_8, %c0_9] : memref<128x128xbf16, #tpu.memory_space<vmem>>, vector<128x128xbf16>
    %cst_10 = arith.constant dense<0.000000e+00> : vector<8x128xf32>
    %23 = tpu.matmul %21, %22, %cst_10 {dimension_numbers = #tpu.dot_dimension_numbers<[1], [0], [0], [1], [0, 0, 1, 1], [], []>} : vector<8x128xbf16>, vector<128x128xbf16>, vector<8x128xf32> -> vector<8x128xf32>
    %c0_11 = arith.constant 0 : index
    %c0_12 = arith.constant 0 : index
    %24 = vector.load %arg5[%c0_11, %c0_12] : memref<1x128xf32, #tpu.memory_space<vmem>>, vector<1x128xf32>
    %25 = vector.broadcast %24 : vector<1x128xf32> to vector<8x128xf32>
    %26 = arith.addf %23, %25 : vector<8x128xf32>
    %cst_13 = arith.constant dense<0xFF800000> : vector<8xf32>
    %27 = vector.multi_reduction <maximumf>, %26, %cst_13 [1] : vector<8x128xf32> to vector<8xf32>
    %28 = vector.shape_cast %27 : vector<8xf32> to vector<8x1xf32>
    %29 = vector.broadcast %28 : vector<8x1xf32> to vector<8x128xf32>
    %30 = arith.subf %26, %29 : vector<8x128xf32>
    %31 = math.exp %30 : vector<8x128xf32>
    %cst_14 = arith.constant dense<0.000000e+00> : vector<8xf32>
    %32 = vector.multi_reduction <add>, %31, %cst_14 [1] : vector<8x128xf32> to vector<8xf32>
    %33 = vector.shape_cast %32 : vector<8xf32> to vector<8x1xf32>
    %34 = tpu.reciprocal %33 {approx = true} : vector<8x1xf32> -> vector<8x1xf32>
    %35 = vector.broadcast %34 : vector<8x1xf32> to vector<8x128xf32>
    %36 = arith.mulf %31, %35 : vector<8x128xf32>
    %c0_15 = arith.constant 0 : index
    %c0_16 = arith.constant 0 : index
    %37 = vector.load %arg6[%c0_15, %c0_16] : memref<8x128xf32, #tpu.memory_space<vmem>>, vector<8x128xf32>
    tpu.vector_store %arg6[%c0_15, %c0_16], %36 {strides = array<i32>} : memref<8x128xf32, #tpu.memory_space<vmem>>, vector<8x128xf32>,
    return
  }
  func.func @transform_0(%arg0: i32) -> (i32, i32, i32) {
    %c0_i32 = arith.constant 0 : i32
    %c0_i32_0 = arith.constant 0 : i32
    %c0_i32_1 = arith.constant 0 : i32
    return %arg0, %c0_i32, %c0_i32_0 : i32, i32, i32
  }
  func.func @transform_1(%arg0: i32) -> (i32, i32) {
    %c0_i32 = arith.constant 0 : i32
    %c0_i32_0 = arith.constant 0 : i32
    %c0_i32_1 = arith.constant 0 : i32
    return %c0_i32, %c0_i32_0 : i32, i32
  }
  func.func @transform_2(%arg0: i32) -> (i32, i32) {
    %c0_i32 = arith.constant 0 : i32
    %c0_i32_0 = arith.constant 0 : i32
    %c0_i32_1 = arith.constant 0 : i32
    return %c0_i32, %c0_i32_0 : i32, i32
  }
  func.func @transform_3(%arg0: i32) -> (i32, i32) {
    %c0_i32 = arith.constant 0 : i32
    %c0_i32_0 = arith.constant 0 : i32
    %c0_i32_1 = arith.constant 0 : i32
    return %c0_i32, %c0_i32_0 : i32, i32
  }
  func.func @transform_4(%arg0: i32) -> (i32, i32) {
    %c0_i32 = arith.constant 0 : i32
    %c0_i32_0 = arith.constant 0 : i32
    %c0_i32_1 = arith.constant 0 : i32
    return %c0_i32, %c0_i32_0 : i32, i32
  }
  func.func @transform_5(%arg0: i32) -> (i32, i32) {
    %c0_i32 = arith.constant 0 : i32
    %c0_i32_0 = arith.constant 0 : i32
    return %arg0, %c0_i32 : i32, i32
  }
}

</mosaic_0001>

<bundles_post_ra>
// kernel: tpu_custom_call.1
= control target key start
LH: loop header
LB: loop body
LE: loop exit
PB: predicated region body
PF: predicated region fallthrough
CT: control target
= control target key end

     0   :  { %10 = vsyncpa [#allocation3], 0  ;;  %s1107_s0 = inlined_call_operand.hbm [shape: bf16[8,8,128], index: 0, kind: input, shape index: {}]   ;;  %s1108_s1 = inlined_call_operand.hbm [shape: bf16[128,128], index: 1, kind: input, shape index: {}]   ;;  %s1109_s2 = inlined_call_operand.hbm [shape: f32[8,128], index: 2, kind: input, shape index: {}]   ;;  %s1110_s3 = inlined_call_operand.hbm [shape: bf16[128,128], index: 3, kind: input, shape index: {}]   ;;  %s1111_s4 = inlined_call_operand.vmem [shape: f32[1,128], index: 4, kind: input, shape index: {}]   ;;  %s1112_s5 = inlined_call_operand.hbm [shape: f32[8,128], index: 5, kind: output, shape index: {}]  }
   0x1   :  { %11 = vsyncpa [#allocation6], 0 }
   0x2   :  { %12 = vsyncpa [#allocation9], 0 }
   0x3   :  { %13 = vsyncpa [#allocation4], 0  ;;  %s844_s18 = smov [#allocation5]   ;;  %s845_s20 = smov [#allocation2]  }
   0x4   :  { %s31_s19 = sshll.u32 %s844_s18, 4  ;;  %s19_s21 = sshll.u32 %s845_s20, 4  ;;  %s32_s19 = int_to_ptr.vmem [resolvable:$true] %s31_s19  ;;  %s886_s21 = int_to_ptr.vmem [resolvable:$true] %s19_s21 }
   0x5   :  { %s726_s24 = scalar_lea.hbm %s1108_s1, 1024 }
   0x6   :  { %p727_p0 = scmp.ne.s32.totalorder %s1108_s1, %s726_s24  ;;  %p730_p1 = scmp.lt.u32.totalorder %s726_s24, %s1108_s1 }
   0x8   :  { %p732_p2 = pnand %p730_p1, %p727_p0 }
   0xa   :  { %735 = shalt.err (!%p732_p2)
}
   0xb   :  { %s736_s29 = scalar_lea.vmem %s32_s19, 1024  ;;  %p741_p4 = scmp.lt.s32.totalorder %s32_s19, %s32_s19 }
   0xc   :  { %p737_p3 = scmp.ne.s32.totalorder %s32_s19, %s736_s29  ;;  %p742_p5 = scmp.lt.s32.totalorder %s736_s29, %s736_s29 }
   0xe   :  { %p743_p6 = por %p742_p5, %p741_p4 }
  0x10   :  { %p744_p7 = pnand %p743_p6, %p737_p3 }
  0x12   :  { %747 = shalt.err (!%p744_p7)
}
  0x13   :  { %s846_s30 = smov 64   ;;  %s847_s6 = smov 4  }
  0x14   :  { %37 = dma.hbm_to_vmem [thread:$0]  %s1108_s1, 1024, %s32_s19, [#allocation6], %s846_s30, %s846_s30, %s847_s6  }
  0x15   :  { %s748_s11 = scalar_lea.hbm %s1107_s0, 512 }
  0x16   :  { %p749_p8 = scmp.ne.s32.totalorder %s1107_s0, %s748_s11  ;;  %p752_p9 = scmp.lt.u32.totalorder %s748_s11, %s1107_s0 }
  0x18   :  { %p754_p10 = pnand %p752_p9, %p749_p8 }
  0x1a   :  { %757 = shalt.err (!%p754_p10)
}
  0x1b   :  { %s758_s16 = scalar_lea.vmem %s886_s21, 512  ;;  %p763_p12 = scmp.lt.s32.totalorder %s886_s21, %s886_s21 }
  0x1c   :  { %p759_p11 = scmp.ne.s32.totalorder %s886_s21, %s758_s16  ;;  %p764_p13 = scmp.lt.s32.totalorder %s758_s16, %s758_s16 }
  0x1e   :  { %p765_p0 = por %p764_p13, %p763_p12 }
  0x20   :  { %p766_p1 = pnand %p765_p0, %p759_p11 }
  0x22   :  { %769 = shalt.err (!%p766_p1)
}
  0x23   :  { %25 = dma.hbm_to_vmem [thread:$0]  %s1107_s0, 512, %s886_s21, [#allocation3], %s846_s30, %s846_s30, %s847_s6  }
  0x24   :  { %s848_s18 = smov [#allocation7]   ;;  %s849_s20 = smov [#allocation8]  }
  0x25   :  { %s44_s19 = sshll.u32 %s848_s18, 4  ;;  %s53_s22 = sshll.u32 %s849_s20, 4  ;;  %s45_s19 = int_to_ptr.vmem [resolvable:$true] %s44_s19  ;;  %s923_s22 = int_to_ptr.vmem [resolvable:$true] %s53_s22 }
  0x26   :  { %s770_s25 = scalar_lea.hbm %s1109_s2, 128 }
  0x27   :  { %p771_p2 = scmp.ne.s32.totalorder %s1109_s2, %s770_s25  ;;  %p774_p3 = scmp.lt.u32.totalorder %s770_s25, %s1109_s2 }
  0x29   :  { %p776_p4 = pnand %p774_p3, %p771_p2 }
  0x2b   :  { %779 = shalt.err (!%p776_p4)
}
  0x2c   :  { %s780_s0 = scalar_lea.vmem %s45_s19, 128  ;;  %p785_p6 = scmp.lt.s32.totalorder %s45_s19, %s45_s19 }
  0x2d   :  { %p781_p5 = scmp.ne.s32.totalorder %s45_s19, %s780_s0  ;;  %p786_p7 = scmp.lt.s32.totalorder %s780_s0, %s780_s0 }
  0x2f   :  { %p787_p8 = por %p786_p7, %p785_p6 }
  0x31   :  { %p788_p9 = pnand %p787_p8, %p781_p5 }
  0x33   :  { %791 = shalt.err (!%p788_p9)
}
  0x34   :  { %47 = dma.hbm_to_vmem [thread:$0]  %s1109_s2, 128, %s45_s19, [#allocation6]  }
  0x35   :  { %s792_s10 = scalar_lea.hbm %s1110_s3, 1024 }
  0x36   :  { %p793_p10 = scmp.ne.s32.totalorder %s1110_s3, %s792_s10  ;;  %p796_p11 = scmp.lt.u32.totalorder %s792_s10, %s1110_s3 }
  0x38   :  { %p798_p12 = pnand %p796_p11, %p793_p10 }
  0x3a   :  { %801 = shalt.err (!%p798_p12)
}
  0x3b   :  { %s802_s15 = scalar_lea.vmem %s923_s22, 1024  ;;  %p807_p0 = scmp.lt.s32.totalorder %s923_s22, %s923_s22 }
  0x3c   :  { %p803_p13 = scmp.ne.s32.totalorder %s923_s22, %s802_s15  ;;  %p808_p1 = scmp.lt.s32.totalorder %s802_s15, %s802_s15 }
  0x3e   :  { %p809_p2 = por %p808_p1, %p807_p0 }
  0x40   :  { %p810_p3 = pnand %p809_p2, %p803_p13 }
  0x42   :  { %813 = shalt.err (!%p810_p3)
}
  0x43   :  { %59 = dma.hbm_to_vmem [thread:$0]  %s1110_s3, 1024, %s923_s22, [#allocation9], %s846_s30, %s846_s30, %s847_s6  }
  0x44   :  { %836 = dma.done.wait [#allocation3], 512  }
  0x45   :  { %837 = vsyncadd [#allocation3], 4294966784 }
  0x46   :  { %838 = dma.done.wait [#allocation6], 1152  }
  0x47   :  { %839 = vsyncadd [#allocation6], 4294966144 }
  0x48   :  { %840 = dma.done.wait [#allocation9], 1024  }
  0x49   :  { %841 = vsyncadd [#allocation9], 4294966272  ;;  %v702_v0 = vld [vmem:[#allocation5] sm:$0xff]   ;;  %v703_v1 = vld [vmem:[#allocation5 + $0x8] sm:$0xff]   ;;  %v244_v12 = vlaneseq  ;;  %s850_s3 = smov 104   ;;  %s851_s30 = smov 120  }
  0x4a   :  { %646 = vmatprep.subr.bf16.mxu0 %v702_v0  ;;  %v704_v2 = vld [vmem:[#allocation5 + $0x10] sm:$0xff]   ;;  %v705_v3 = vld [vmem:[#allocation5 + $0x18] sm:$0xff]   ;;  %v710_v4 = vld [vmem:[#allocation2] sm:$0xff]   ;;  %s852_s6 = smov 112   ;;  %vm854_vm3 = vmmov 0   ;;  %vm473_vm4 = vcmask 1041409  }
  0x4b   :  { %647 = vmatpush3.bf16.msra.mxu0 %v702_v0  ;;  %662 = vmatprep.mubr.bf16.mxu0 %v710_v4  ;;  %v706_v5 = vld [vmem:[#allocation5 + $0x20] sm:$0xff]   ;;  %v707_v6 = vld [vmem:[#allocation5 + $0x28] sm:$0xff]   ;;  %v708_v7 = vld [vmem:[#allocation5 + $0x30] sm:$0xff]   ;;  %v957_v13 = vshrl.u32 %v244_v12, 7  ;;  %vm475_vm5 = vcmask 1042434   ;;  %vm477_vm6 = vcmask 1043459  }
  0x4c   :  { %648 = vmatprep.subr.bf16.mxu0 %v703_v1  ;;  %v709_v8 = vld [vmem:[#allocation5 + $0x38] sm:$0xff]   ;;  %v711_v9 = vld [vmem:[#allocation2 + $0x8] sm:$0xff]   ;;  %v712_v10 = vld [vmem:[#allocation2 + $0x10] sm:$0xff]   ;;  %vm479_vm7 = vcmask 1044484   ;;  %vm481_vm8 = vcmask 1045509   ;;  %vm483_vm9 = vcmask 1046534  }
  0x4d   :  { %v713_v11 = vld [vmem:[#allocation2 + $0x18] sm:$0xff]   ;;  %vm328_vm0 = vcmp.lt.s32.totalorder %v957_v13, 5  ;;  %vm246_vm1 = vcmp.lt.s32.totalorder %v957_v13, 7  ;;  %vm287_vm2 = vcmp.lt.s32.totalorder %v957_v13, 6  ;;  %v719_v12 = vld [vmem:[#allocation8 + $0x28] sm:$0xff]   ;;  %vm485_vm10 = vcmask 1047559  }
  0x4e   :  { %v720_v13 = vld [vmem:[#allocation8 + $0x30] sm:$0xff]   ;;  %s855_s18 = smov [#allocation10]  }
  0x4f   :  { %649 = vmatpush3.bf16.msra.mxu0 %v703_v1  ;;  %s593_s19 = sshll.u32 %s855_s18, 4  ;;  %s594_s19 = int_to_ptr.vmem [resolvable:$true] %s593_s19 }
  0x50   :  { %650 = vmatprep.subr.bf16.mxu0 %v704_v2  ;;  %p819_p5 = scmp.lt.s32.totalorder %s594_s19, %s594_s19 }
  0x53   :  { %651 = vmatpush3.bf16.msra.mxu0 %v704_v2 }
  0x54   :  { %652 = vmatprep.subr.bf16.mxu0 %v705_v3 }
  0x57   :  { %653 = vmatpush3.bf16.msra.mxu0 %v705_v3 }
  0x58   :  { %654 = vmatprep.subr.bf16.mxu0 %v706_v5 }
  0x5b   :  { %655 = vmatpush3.bf16.msra.mxu0 %v706_v5 }
  0x5c   :  { %656 = vmatprep.subr.bf16.mxu0 %v707_v6 }
  0x5f   :  { %657 = vmatpush3.bf16.msra.mxu0 %v707_v6  ;;  %v714_v6 = vld [vmem:[#allocation8] sm:$0xff]  }
  0x60   :  { %658 = vmatprep.subr.bf16.mxu0 %v708_v7 }
  0x63   :  { %659 = vmatpush3.bf16.msra.mxu0 %v708_v7  ;;  %v853_v7 = vmov 0.0  }
  0x64   :  { %660 = vmatprep.subr.bf16.mxu0 %v709_v8  ;;  %670 = vmatprep.subr.bf16.mxu1 %v853_v7 }
  0x65   :  { %671 = vmatpush3.bf16.msra.mxu1 %v714_v6  ;;  %686 = vmatprep.mubr.msk.bf16.mxu1 %vm854_vm3, %v853_v7 }
  0x66   :  { %672 = vmatprep.subr.bf16.mxu1 %v853_v7 }
  0x67   :  { %661 = vmatpush3.bf16.msra.mxu0 %v709_v8  ;;  %v715_v8 = vld [vmem:[#allocation8 + $0x8] sm:$0xff]  }
  0x69   :  { %673 = vmatpush3.bf16.msra.mxu1 %v715_v8 }
  0x6a   :  { %663 = vmatmul.mubr.bf16.vlgmr.msra.gmra.mrb[0].mxu0 %v711_v9  ;;  %674 = vmatprep.subr.bf16.mxu1 %v853_v7  ;;  %v716_v9 = vld [vmem:[#allocation8 + $0x10] sm:$0xff]  }
  0x6b   :  { %666 = vmatprep.mubr.bf16.mxu0 %v712_v10  ;;  %v717_v10 = vld [vmem:[#allocation8 + $0x18] sm:$0xff]  }
  0x6d   :  { %675 = vmatpush3.bf16.msra.mxu1 %v716_v9 }
  0x6e   :  { %676 = vmatprep.subr.bf16.mxu1 %v853_v7 }
  0x71   :  { %677 = vmatpush3.bf16.msra.mxu1 %v717_v10 }
  0x72   :  { %667 = vmatmul.mubr.bf16.gmra.mrb[4].mxu0 %v713_v11  ;;  %678 = vmatprep.subr.bf16.mxu1 %v853_v7  ;;  %v718_v11 = vld [vmem:[#allocation8 + $0x20] sm:$0xff]  }
  0x75   :  { %679 = vmatpush3.bf16.msra.mxu1 %v718_v11 }
  0x76   :  { %680 = vmatprep.subr.bf16.mxu1 %v853_v7 }
  0x79   :  { %681 = vmatpush3.bf16.msra.mxu1 %v719_v12 }
  0x7a   :  { %682 = vmatprep.subr.bf16.mxu1 %v853_v7 }
  0x7d   :  { %683 = vmatpush3.bf16.msra.mxu1 %v720_v13 }
  0x7e   :  { %684 = vmatprep.subr.bf16.mxu1 %v853_v7 }
 0x13d   :  { %v959_v14 = vpop.f32.mrb[0].mxu0 }
 0x13e   :  { %v961_v15 = vpop.f32.mrb[1].mxu0  ;;  %v281_v16 = vrot.slane %v959_v14, 2  ;;  %v322_v18 = vrot.slane %v959_v14, 3  ;;  %v238_v19 = vrot.slane %v959_v14, 1 }
 0x13f   :  { %v966_v17 = vpop.f32.mrb[2].mxu0  ;;  %v236_v20 = vrot.slane %v961_v15, 1  ;;  %v279_v25 = vrot.slane %v961_v15, 2  ;;  %v320_v29 = vrot.slane %v961_v15, 3 }
 0x140   :  { %v282_v21 = vrot.slane %v966_v17, 2  ;;  %v973_v22 = vpop.f32.mrb[3].mxu0  ;;  %v323_v23 = vrot.slane %v966_v17, 3  ;;  %v239_v24 = vrot.slane %v966_v17, 1 }
 0x141   :  { %v237_v26 = vrot.slane %v973_v22, 1  ;;  %v280_v27 = vrot.slane %v973_v22, 2  ;;  %v321_v28 = vrot.slane %v973_v22, 3 }
 0x142   :  { %v333_v30 = vsel %vm328_vm0, %v322_v18, %v323_v23  ;;  %v251_v31 = vsel %vm246_vm1, %v238_v19, %v239_v24  ;;  %v292_v32 = vsel %vm287_vm2, %v281_v16, %v282_v21 }
 0x143   :  { %341 = vrot.lane.b32.xlu0 %v333_v30, %s850_s3  ;;  %259 = vrot.lane.b32.xlu1 %v251_v31, %s851_s30  ;;  %v253_v33 = vsel %vm246_vm1, %v236_v20, %v237_v26  ;;  %v293_v34 = vsel %vm287_vm2, %v280_v27, %v281_v16  ;;  %v252_v35 = vsel %vm246_vm1, %v237_v26, %v238_v19  ;;  %v721_v16 = vld [vmem:[#allocation8 + $0x38] sm:$0xff]  }
 0x144   :  { %v334_v36 = vsel %vm328_vm0, %v321_v28, %v322_v18  ;;  %v294_v37 = vsel %vm287_vm2, %v279_v25, %v280_v27  ;;  %v335_v38 = vsel %vm328_vm0, %v320_v29, %v321_v28  ;;  %685 = vmatpush3.bf16.msra.mxu1 %v721_v16 }
 0x145   :  { %v1002_v39 = vpop.f32.mrb[4].mxu0 }
 0x146   :  { %v242_v40 = vrot.slane %v1002_v39, 1  ;;  %v285_v41 = vrot.slane %v1002_v39, 2  ;;  %v1006_v42 = vpop.f32.mrb[5].mxu0  ;;  %v326_v47 = vrot.slane %v1002_v39, 3 }
 0x147   :  { %v240_v43 = vrot.slane %v1006_v42, 1  ;;  %v283_v44 = vrot.slane %v1006_v42, 2  ;;  %v324_v45 = vrot.slane %v1006_v42, 3  ;;  %300 = vrot.lane.b32.xlu1 %v292_v32, %s852_s6  ;;  %255 = vrot.lane.b32.xlu0 %v253_v33, %s851_s30  ;;  %v1013_v46 = vpop.f32.mrb[6].mxu0 }
 0x148   :  { %v243_v48 = vrot.slane %v1013_v46, 1  ;;  %v286_v49 = vrot.slane %v1013_v46, 2  ;;  %v327_v50 = vrot.slane %v1013_v46, 3  ;;  %v1019_v51 = vpop.f32.mrb[7].mxu0 }
 0x149   :  { %v241_v52 = vrot.slane %v1019_v51, 1  ;;  %v284_v53 = vrot.slane %v1019_v51, 2  ;;  %v325_v54 = vrot.slane %v1019_v51, 3  ;;  %v250_v55 = vsel %vm246_vm1, %v239_v24, %v240_v43 }
 0x14a   :  { %v291_v56 = vsel %vm287_vm2, %v282_v21, %v283_v44  ;;  %v247_v57 = vsel %vm246_vm1, %v242_v40, %v243_v48  ;;  %v332_v58 = vsel %vm328_vm0, %v323_v23, %v324_v45  ;;  %v288_v59 = vsel %vm287_vm2, %v285_v41, %v286_v49 }
 0x14b   :  { %298 = vrot.lane.b32.xlu1 %v293_v34, %s852_s6  ;;  %257 = vrot.lane.b32.xlu0 %v252_v35, %s851_s30  ;;  %v254_v60 = vsel %vm246_vm1, %v243_v48, %v236_v20  ;;  %v295_v61 = vsel %vm287_vm2, %v286_v49, %v279_v25  ;;  %v290_v62 = vsel %vm287_vm2, %v283_v44, %v284_v53  ;;  %v1075_v25 = vld [vmem:[#allocation7] sm:$0xff] }
 0x14c   :  { %v249_v63 = vsel %vm246_vm1, %v240_v43, %v241_v52  ;;  %v331_v0 = vsel %vm328_vm0, %v324_v45, %v325_v54  ;;  %v248_v1 = vsel %vm246_vm1, %v241_v52, %v242_v40  ;;  %v330_v2 = vsel %vm328_vm0, %v325_v54, %v326_v47 }
 0x14d   :  { %v289_v3 = vsel %vm287_vm2, %v284_v53, %v285_v41  ;;  %v336_v4 = vsel %vm328_vm0, %v327_v50, %v320_v29  ;;  %v329_v5 = vsel %vm328_vm0, %v326_v47, %v327_v50 }
 0x14f   :  { %339 = vrot.lane.b32.xlu1 %v334_v36, %s850_s3  ;;  %296 = vrot.lane.b32.xlu0 %v294_v37, %s852_s6 }
 0x153   :  { %337 = vrot.lane.b32.xlu0 %v335_v38, %s850_s3  ;;  %261 = vrot.lane.b32.xlu1 %v250_v55, %s851_s30 }
 0x157   :  { %302 = vrot.lane.b32.xlu1 %v291_v56, %s852_s6  ;;  %267 = vrot.lane.b32.xlu0 %v247_v57, %s851_s30 }
 0x15b   :  { %343 = vrot.lane.b32.xlu1 %v332_v58, %s850_s3  ;;  %308 = vrot.lane.b32.xlu0 %v288_v59, %s852_s6 }
 0x15f   :  { %269 = vrot.lane.b32.xlu1 %v254_v60, %s851_s30  ;;  %310 = vrot.lane.b32.xlu0 %v295_v61, %s852_s6 }
 0x163   :  { %304 = vrot.lane.b32.xlu1 %v290_v62, %s852_s6  ;;  %263 = vrot.lane.b32.xlu0 %v249_v63, %s851_s30 }
 0x167   :  { %345 = vrot.lane.b32.xlu1 %v331_v0, %s850_s3  ;;  %265 = vrot.lane.b32.xlu0 %v248_v1, %s851_s30 }
 0x16b   :  { %347 = vrot.lane.b32.xlu1 %v330_v2, %s850_s3  ;;  %306 = vrot.lane.b32.xlu0 %v289_v3, %s852_s6 }
 0x16f   :  { %351 = vrot.lane.b32.xlu1 %v336_v4, %s850_s3  ;;  %349 = vrot.lane.b32.xlu0 %v329_v5, %s850_s3 }
 0x1b5   :  { %v342_v18 = vpop.permute.xlu0 %341  ;;  %v260_v19 = vpop.permute.xlu1 %259 }
 0x1b6   :  { %v273_v20 = vadd.f32 %v959_v14, %v260_v19 }
 0x1b9   :  { %v301_v21 = vpop.permute.xlu1 %300  ;;  %v256_v23 = vpop.permute.xlu0 %255 }
 0x1ba   :  { %v314_v24 = vadd.f32 %v301_v21, %v273_v20  ;;  %v271_v36 = vadd.f32 %v256_v23, %v961_v15 }
 0x1bc   :  { %v355_v26 = vadd.f32 %v342_v18, %v314_v24 }
 0x1bd   :  { %v299_v27 = vpop.permute.xlu1 %298  ;;  %v258_v28 = vpop.permute.xlu0 %257 }
 0x1be   :  { %v364_v29 = vadd.f32 %v1075_v25, %v355_v26  ;;  %v272_v30 = vadd.f32 %v258_v28, %v973_v22 }
 0x1c0   :  { %v372_v31 = vmax.f32 %v364_v29, 0.0  ;;  %v313_v32 = vadd.f32 %v299_v27, %v272_v30 }
 0x1c1   :  { %v340_v33 = vpop.permute.xlu1 %339  ;;  %v297_v34 = vpop.permute.xlu0 %296 }
 0x1c2   :  { %v390_v35 = vrot.slane %v372_v31, 4  ;;  %v354_v14 = vadd.f32 %v340_v33, %v313_v32  ;;  %v312_v40 = vadd.f32 %v297_v34, %v271_v36 }
 0x1c4   :  { %v391_v37 = vmax.f32 %v372_v31, %v390_v35  ;;  %v363_v38 = vadd.f32 %v1075_v25, %v354_v14 }
 0x1c5   :  { %v338_v41 = vpop.permute.xlu0 %337  ;;  %v262_v43 = vpop.permute.xlu1 %261 }
 0x1c6   :  { %v371_v44 = vmax.f32 %v363_v38, 0.0  ;;  %v353_v45 = vadd.f32 %v338_v41, %v312_v40  ;;  %v392_v47 = vrot.slane %v391_v37, 2  ;;  %v274_v54 = vadd.f32 %v966_v17, %v262_v43 }
 0x1c8   :  { %v384_v48 = vrot.slane %v371_v44, 4  ;;  %v362_v22 = vadd.f32 %v1075_v25, %v353_v45  ;;  %v393_v15 = vmax.f32 %v391_v37, %v392_v47 }
 0x1c9   :  { %v303_v49 = vpop.permute.xlu1 %302  ;;  %v268_v50 = vpop.permute.xlu0 %267 }
 0x1ca   :  { %v385_v52 = vmax.f32 %v371_v44, %v384_v48  ;;  %v370_v53 = vmax.f32 %v362_v22, 0.0  ;;  %v315_v57 = vadd.f32 %v303_v49, %v274_v54  ;;  %v394_v63 = vrot.slane %v393_v15, 1 }
 0x1cb   :  { %v277_v43 = vadd.f32 %v1002_v39, %v268_v50 }
 0x1cc   :  { %v386_v55 = vrot.slane %v385_v52, 2  ;;  %v378_v56 = vrot.slane %v370_v53, 4  ;;  %v395_v17 = vmax.f32 %v393_v15, %v394_v63 }
 0x1cd   :  { %v344_v58 = vpop.permute.xlu1 %343  ;;  %v309_v59 = vpop.permute.xlu0 %308 }
 0x1ce   :  { %v387_v60 = vmax.f32 %v385_v52, %v386_v55  ;;  %v379_v61 = vmax.f32 %v370_v53, %v378_v56  ;;  %v356_v62 = vadd.f32 %v344_v58, %v315_v57  ;;  %v428_v19 = vpack.c.bf16 %v395_v17, %v395_v17 }
 0x1cf   :  { %v318_v22 = vadd.f32 %v309_v59, %v277_v43 }
 0x1d0   :  { %v388_v0 = vrot.slane %v387_v60, 1  ;;  %v380_v1 = vrot.slane %v379_v61, 2  ;;  %v365_v2 = vadd.f32 %v1075_v25, %v356_v62  ;;  %v467_v31 = vunpack.c.l.b16 %v428_v19 }
 0x1d1   :  { %v270_v3 = vpop.permute.xlu1 %269  ;;  %v311_v4 = vpop.permute.xlu0 %310 }
 0x1d2   :  { %v389_v5 = vmax.f32 %v387_v60, %v388_v0  ;;  %v381_v6 = vmax.f32 %v379_v61, %v380_v1  ;;  %v373_v7 = vmax.f32 %v365_v2, 0.0  ;;  %v278_v32 = vadd.f32 %v1013_v46, %v270_v3 }
 0x1d4   :  { %v382_v8 = vrot.slane %v381_v6, 1  ;;  %v396_v9 = vrot.slane %v373_v7, 4  ;;  %v427_v12 = vpack.c.bf16 %v389_v5, %v389_v5  ;;  %v319_v45 = vadd.f32 %v311_v4, %v278_v32 }
 0x1d5   :  { %v305_v10 = vpop.permute.xlu1 %304  ;;  %v264_v11 = vpop.permute.xlu0 %263 }
 0x1d6   :  { %v383_v13 = vmax.f32 %v381_v6, %v382_v8  ;;  %v397_v16 = vmax.f32 %v373_v7, %v396_v9  ;;  %v275_v18 = vadd.f32 %v264_v11, %v1006_v42  ;;  %v466_v27 = vunpack.c.l.b16 %v427_v12 }
 0x1d8   :  { %v426_v20 = vpack.c.bf16 %v383_v13, %v383_v13  ;;  %v398_v21 = vrot.slane %v397_v16, 2  ;;  %v316_v23 = vadd.f32 %v305_v10, %v275_v18 }
 0x1d9   :  { %v346_v24 = vpop.permute.xlu1 %345  ;;  %v266_v26 = vpop.permute.xlu0 %265 }
 0x1da   :  { %v465_v28 = vunpack.c.l.b16 %v426_v20  ;;  %v399_v29 = vmax.f32 %v397_v16, %v398_v21  ;;  %v357_v30 = vadd.f32 %v346_v24, %v316_v23  ;;  %v276_v42 = vadd.f32 %v266_v26, %v1019_v51 }
 0x1dc   :  { %v474_v33 = vsel %vm473_vm4, %v466_v27, %v465_v28  ;;  %v400_v34 = vrot.slane %v399_v29, 1  ;;  %v366_v35 = vadd.f32 %v1075_v25, %v357_v30 }
 0x1dd   :  { %v348_v36 = vpop.permute.xlu1 %347  ;;  %v307_v14 = vpop.permute.xlu0 %306  ;;  %v476_v37 = vsel %vm475_vm5, %v467_v31, %v474_v33  ;;  %v616_v33 = vld [vmem:[%s1111_s4] ss:$0 sm:$0xff]  ;;  %s814_s4 = scalar_lea.vmem %s594_s19, 128 }
 0x1de   :  { %v401_v38 = vmax.f32 %v399_v29, %v400_v34  ;;  %v374_v40 = vmax.f32 %v366_v35, 0.0  ;;  %v317_v41 = vadd.f32 %v307_v14, %v276_v42  ;;  %p815_p4 = scmp.ne.s32.totalorder %s594_s19, %s814_s4  ;;  %p820_p6 = scmp.lt.s32.totalorder %s814_s4, %s814_s4 }
 0x1e0   :  { %v429_v44 = vpack.c.bf16 %v401_v38, %v401_v38  ;;  %v402_v47 = vrot.slane %v374_v40, 4  ;;  %v358_v48 = vadd.f32 %v348_v36, %v317_v41  ;;  %p821_p7 = por %p820_p6, %p819_p5 }
 0x1e1   :  { %v352_v46 = vpop.permute.xlu1 %351  ;;  %v350_v49 = vpop.permute.xlu0 %349 }
 0x1e2   :  { %v468_v52 = vunpack.c.l.b16 %v429_v44  ;;  %v403_v53 = vmax.f32 %v374_v40, %v402_v47  ;;  %v367_v51 = vadd.f32 %v1075_v25, %v358_v48  ;;  %v360_v54 = vadd.f32 %v352_v46, %v319_v45  ;;  %p822_p8 = pnand %p821_p7, %p815_p4 }
 0x1e3   :  { %v359_v15 = vadd.f32 %v350_v49, %v318_v22 }
 0x1e4   :  { %v404_v55 = vrot.slane %v403_v53, 2  ;;  %v375_v56 = vmax.f32 %v367_v51, 0.0  ;;  %v369_v57 = vadd.f32 %v1075_v25, %v360_v54  ;;  %v478_v58 = vsel %vm477_vm6, %v468_v52, %v476_v37 }
 0x1e5   :  { %v368_v39 = vadd.f32 %v1075_v25, %v359_v15 }
 0x1e6   :  { %v405_v50 = vmax.f32 %v403_v53, %v404_v55  ;;  %v408_v60 = vrot.slane %v375_v56, 4  ;;  %v377_v61 = vmax.f32 %v369_v57, 0.0 }
 0x1e7   :  { %v376_v59 = vmax.f32 %v368_v39, 0.0 }
 0x1e8   :  { %v406_v62 = vrot.slane %v405_v50, 1  ;;  %v409_v63 = vmax.f32 %v375_v56, %v408_v60  ;;  %v420_v0 = vrot.slane %v377_v61, 4 }
 0x1e9   :  { %v414_v1 = vrot.slane %v376_v59, 4 }
 0x1ea   :  { %v407_v2 = vmax.f32 %v405_v50, %v406_v62  ;;  %v410_v3 = vrot.slane %v409_v63, 2  ;;  %v421_v4 = vmax.f32 %v377_v61, %v420_v0 }
 0x1eb   :  { %v415_v5 = vmax.f32 %v376_v59, %v414_v1 }
 0x1ec   :  { %v430_v6 = vpack.c.bf16 %v407_v2, %v407_v2  ;;  %v411_v7 = vmax.f32 %v409_v63, %v410_v3  ;;  %v422_v17 = vrot.slane %v421_v4, 2 }
 0x1ed   :  { %v416_v8 = vrot.slane %v415_v5, 2 }
 0x1ee   :  { %v469_v9 = vunpack.c.l.b16 %v430_v6  ;;  %v412_v10 = vrot.slane %v411_v7, 1  ;;  %v423_v25 = vmax.f32 %v421_v4, %v422_v17 }
 0x1ef   :  { %v417_v11 = vmax.f32 %v415_v5, %v416_v8 }
 0x1f0   :  { %v413_v12 = vmax.f32 %v411_v7, %v412_v10  ;;  %v424_v13 = vrot.slane %v423_v25, 1  ;;  %v480_v16 = vsel %vm479_vm7, %v469_v9, %v478_v58 }
 0x1f1   :  { %v418_v18 = vrot.slane %v417_v11, 1 }
 0x1f2   :  { %v431_v19 = vpack.c.bf16 %v413_v12, %v413_v12  ;;  %v425_v20 = vmax.f32 %v423_v25, %v424_v13 }
 0x1f3   :  { %v419_v21 = vmax.f32 %v417_v11, %v418_v18 }
 0x1f4   :  { %v470_v23 = vunpack.c.l.b16 %v431_v19  ;;  %v433_v24 = vpack.c.bf16 %v425_v20, %v425_v20 }
 0x1f5   :  { %v432_v26 = vpack.c.bf16 %v419_v21, %v419_v21 }
 0x1f6   :  { %v472_v27 = vunpack.c.l.b16 %v433_v24  ;;  %v482_v28 = vsel %vm481_vm8, %v470_v23, %v480_v16 }
 0x1f7   :  { %v471_v29 = vunpack.c.l.b16 %v432_v26 }
 0x1f9   :  { %v484_v30 = vsel %vm483_vm9, %v471_v29, %v482_v28 }
 0x1fa   :  { %v486_v31 = vsel %vm485_vm10, %v472_v27, %v484_v30 }
 0x1fb   :  { %v487_v32 = vpack.c.b16 %v486_v31, %v486_v31 }
 0x1fd   :  { %687 = vmatmul.mubr.bf16.vlgmr.msra.gmra.mrb[0].mxu1 %v487_v32 }
 0x2d0   :  { %v571_v34 = vpop.f32.mrb[0].mxu1 }
 0x2d1   :  { %v572_v35 = vadd.f32 %v616_v33, %v571_v34  ;;  %v688_v42 = vpop.f32.mrb[1].mxu1 }
 0x2d2   :  { %v574_v36 = vpop.f32.mrb[2].mxu1 }
 0x2d3   :  { %577 = vmax.xlane.f32.xlu0 %v572_v35  ;;  %v689_v14 = vpop.f32.mrb[3].mxu1 }
 0x360   :  { %v578_v37 = vpop.xlane.xlu0 %577 }
 0x361   :  { %v579_v38 = vsub.f32 %v572_v35, %v578_v37 }
 0x363   :  { %v580_v40 = vmul.f32 1.442695, %v579_v38 }
 0x365   :  { %722 = vpow2.f32 %v580_v40 }
 0x36f   :  { %v723_v41 = vpop.eup %722 }
 0x370   :  { %582 = vadd.xlane.f32.xlu1 %v723_v41 }
 0x3fd   :  { %v583_v43 = vpop.xlane.xlu1 %582 }
 0x3fe   :  { %724 = vrcp.f32 %v583_v43 }
 0x408   :  { %v725_v44 = vpop.eup %724 }
 0x409   :  { %v585_v45 = vmul.f32 %v725_v44, %v723_v41 }
 0x40b   :  { %586 = vst [vmem:[#allocation10] sm:$0xff] %v585_v45 }
 0x40c   :  { %825 = shalt.err (!%p822_p8)
}
 0x40d   :  { %s826_s23 = scalar_lea.hbm %s1112_s5, 128 }
 0x40e   :  { %p827_p9 = scmp.ne.s32.totalorder %s1112_s5, %s826_s23  ;;  %p830_p10 = scmp.lt.u32.totalorder %s826_s23, %s1112_s5 }
 0x410   :  { %p832_p11 = pnand %p830_p10, %p827_p9 }
 0x412   :  { %835 = shalt.err (!%p832_p11)
}
 0x413   :  { %596 = dma.vmem_to_hbm [thread:$0]  %s594_s19, 128, %s1112_s5, [#allocation4]  }
 0x414   :  { %842 = dma.done.wait [#allocation4], 128  }
 0x415   :  { %843 = vsyncadd [#allocation4], 4294967168 }
 0x416   :  { %600 = vsyncpa [#allocation3], 1 }
 0x417   :  { %601 = vsyncpa [#allocation6], 1 }
 0x418   :  { %602 = vsyncpa [#allocation9], 1 }
 0x419   :  { %603 = vsyncpa [#allocation4], 1 }

</bundles_post_ra>
